<compile_context>
chip_gen: v5e
topology: v5e:2x2
jax: 0.10.0
libtpu: 0.0.40
codegen_flags: <defaults>
</compile_context>

<pallas_src>
import functools

import jax
import jax.numpy as jnp
from jax import lax
from jax.experimental import pallas as pl
from jax.experimental.pallas import tpu as pltpu


# ----------------------------------------------------------------------------
# Kernels
# ----------------------------------------------------------------------------
def _layernorm_kernel(x_ref, gamma_ref, beta_ref, o_ref, *, eps, hidden):
    """Plain path: one logical row per physical row (hidden is the lane dim)."""
    x = x_ref[...].astype(jnp.float32)                       # (tile, hidden)

    # Two-pass mean/variance (matches torch's two-pass std; no cancellation).
    mean = jnp.sum(x, axis=-1, keepdims=True) * (1.0 / hidden)
    d = x - mean                                             # centered, reused below
    # NOTE: hidden must be >= 2 (hidden == 1 gives inf/nan, same as torch ddof=1).
    var = jnp.sum(d * d, axis=-1, keepdims=True) * (1.0 / (hidden - 1))
    std = jnp.sqrt(jnp.maximum(var, 0.0))

    inv = pl.reciprocal(std + eps, approx=False)             # (tile, 1)
    y = d * inv
    o_ref[...] = (y * gamma_ref[...] + beta_ref[...]).astype(o_ref.dtype)


def _layernorm_packed_kernel(x_ref, gamma_ref, beta_ref, seg_ref, segt_ref,
                             o_ref, *, eps, hidden):
    """Lane-packed path: `pack` logical rows per physical row.

    seg_ref : (pack*hidden, pack) 0/1 segment matrix  (x @ S  -> per-row sums)
    segt_ref: (pack, pack*hidden) its transpose       (m @ S' -> broadcast back)
    """
    x = x_ref[...].astype(jnp.float32)                       # (tile, pack*hidden)
    seg = seg_ref[...]
    segt = segt_ref[...]
    prec = lax.Precision.HIGHEST  # keep f32 accuracy through the MXU

    sums = jnp.dot(x, seg, preferred_element_type=jnp.float32,
                   precision=prec)                           # (tile, pack)
    mean = sums * (1.0 / hidden)
    mean_full = jnp.dot(mean, segt, preferred_element_type=jnp.float32,
                        precision=prec)                      # (tile, pack*hidden)

    d = x - mean_full
    ss = jnp.dot(d * d, seg, preferred_element_type=jnp.float32,
                 precision=prec)                             # (tile, pack)
    var = ss * (1.0 / (hidden - 1))
    std = jnp.sqrt(jnp.maximum(var, 0.0))

    inv = pl.reciprocal(std + eps, approx=False)             # (tile, pack)
    inv_full = jnp.dot(inv, segt, preferred_element_type=jnp.float32,
                       precision=prec)                       # (tile, pack*hidden)

    y = d * inv_full
    o_ref[...] = (y * gamma_ref[...] + beta_ref[...]).astype(o_ref.dtype)


# ----------------------------------------------------------------------------
# Wrapper
# ----------------------------------------------------------------------------
def layer_norm(x, gamma, beta, eps=1e-5, *, row_tile=None,
               target_block_bytes=8 * 1024 * 1024):
    orig_shape = x.shape
    hidden = orig_shape[-1]
    x2 = x.reshape(-1, hidden)
    rows = x2.shape[0]

    gamma_f32 = gamma.reshape(-1).astype(jnp.float32)
    beta_f32 = beta.reshape(-1).astype(jnp.float32)

    # ---- lane packing for small hidden (lane-dense in/out blocks) ----------
    pack = 1
    if hidden < 128:
        p = max(1, 128 // hidden)
        if p > 1 and rows % p == 0:
            pack = p
    width = pack * hidden
    rows_phys = rows // pack

    if pack > 1:
        x2 = x2.reshape(rows_phys, width)            # free reshape (contiguous)
        gamma2 = jnp.tile(gamma_f32, (pack,)).reshape(1, width)
        beta2 = jnp.tile(beta_f32, (pack,)).reshape(1, width)
        seg = (jnp.arange(width)[:, None] // hidden
               == jnp.arange(pack)[None, :]).astype(jnp.float32)   # (width, pack)
        segt = seg.T                                                # (pack, width)
    else:
        gamma2 = gamma_f32.reshape(1, width)
        beta2 = beta_f32.reshape(1, width)

    # ---- generation-aware VMEM budget ---------------------------------------
    try:
        info = pltpu.get_tpu_info()
        vmem_cap = int(getattr(info, "vmem_capacity_bytes", 64 * 1024 * 1024))
    except Exception:
        vmem_cap = 64 * 1024 * 1024  # conservative (v7x per-TC)
    vmem_limit = int(max(32 * 1024 * 1024,
                         min(int(vmem_cap * 0.75), 112 * 1024 * 1024)))

    # ---- dtype-aware row tile ------------------------------------------------
    itemsize = jnp.dtype(x.dtype).itemsize
    bytes_per_row_io = max(width * itemsize, 1)      # HBM bytes / physical row
    bytes_per_row_f32 = width * 4                    # in-kernel f32 working set

    if row_tile is None:
        target_rows = max(8, int(target_block_bytes) // bytes_per_row_io)
        # double-buffered in + out  (+ ~3 full-tile f32 intermediates)
        per_row_vmem = 4 * bytes_per_row_io + 3 * bytes_per_row_f32
        fit_rows = max(8, (vmem_limit - 2 * 1024 * 1024) // per_row_vmem)
        row_tile = min(target_rows, fit_rows)

    row_tile = int(min(row_tile, rows_phys))
    if rows_phys >= 8:
        row_tile = max(8, (row_tile // 8) * 8)       # legal sublane tile
    else:
        row_tile = rows_phys                         # block == full array dim

    grid = pl.cdiv(rows_phys, row_tile)              # partial tail block masked

    # ---- pallas_call ---------------------------------------------------------
    if pack > 1:
        kernel = functools.partial(_layernorm_packed_kernel,
                                   eps=float(eps), hidden=hidden)
        in_specs = [
            pl.BlockSpec((row_tile, width), lambda i: (i, 0)),
            pl.BlockSpec((1, width), lambda i: (0, 0)),
            pl.BlockSpec((1, width), lambda i: (0, 0)),
            pl.BlockSpec((width, pack), lambda i: (0, 0)),
            pl.BlockSpec((pack, width), lambda i: (0, 0)),
        ]
        args = (x2, gamma2, beta2, seg, segt)
    else:
        kernel = functools.partial(_layernorm_kernel,
                                   eps=float(eps), hidden=hidden)
        in_specs = [
            pl.BlockSpec((row_tile, width), lambda i: (i, 0)),
            pl.BlockSpec((1, width), lambda i: (0, 0)),
            pl.BlockSpec((1, width), lambda i: (0, 0)),
        ]
        args = (x2, gamma2, beta2)

    out = pl.pallas_call(
        kernel,
        out_shape=jax.ShapeDtypeStruct((rows_phys, width), x.dtype),
        grid_spec=pltpu.PrefetchScalarGridSpec(
            num_scalar_prefetch=0,
            grid=(grid,),
            in_specs=in_specs,
            out_specs=pl.BlockSpec((row_tile, width), lambda i: (i, 0)),
        ),
        compiler_params=pltpu.CompilerParams(
            # rows are independent -> let megacore chips split the grid
            dimension_semantics=("parallel",),
            vmem_limit_bytes=vmem_limit,
        ),
    )(*args)

    return out.reshape(orig_shape)


# ----------------------------------------------------------------------------
# Self-test
# ----------------------------------------------------------------------------
def _reference(x, gamma, beta, eps):
    mean = jnp.mean(x, axis=-1, keepdims=True)
    std = jnp.std(x, axis=-1, keepdims=True, ddof=1)
    return gamma * (x - mean) / (std + eps) + beta


if __name__ == "__main__":
    key = jax.random.PRNGKey(0)

    # Case 1: small hidden (exercises the lane-packed path), matches module spec.
    batch, seq, hidden = 2, 8, 32
    x = jax.random.normal(key, (batch, seq, hidden), dtype=jnp.float32)
    gamma = jnp.ones((hidden,), dtype=jnp.float32)    # nn.Parameter(torch.ones)
    beta = jnp.zeros((hidden,), dtype=jnp.float32)    # nn.Parameter(torch.zeros)

    out = jax.block_until_ready(layer_norm(x, gamma, beta, eps=1e-5))
    ref = _reference(x, gamma, beta, 1e-5)
    assert jnp.allclose(out, ref, atol=1e-5, rtol=1e-5), "packed path mismatch"

    # Case 2: lane-dense hidden (exercises the plain path).
    hidden2 = 128
    k2 = jax.random.PRNGKey(1)
    x2 = jax.random.normal(k2, (2, 8, hidden2), dtype=jnp.float32)
    gamma2 = jnp.ones((hidden2,), dtype=jnp.float32)
    beta2 = jnp.zeros((hidden2,), dtype=jnp.float32)

    out2 = jax.block_until_ready(layer_norm(x2, gamma2, beta2, eps=1e-5))
    ref2 = _reference(x2, gamma2, beta2, 1e-5)
    assert jnp.allclose(out2, ref2, atol=1e-5, rtol=1e-5), "plain path mismatch"

    print("KERNEL_OK")
</pallas_src>

<mosaic_0001>
module attributes {stable_mosaic.version = 11 : i64} {
  func.func @_layernorm_packed_kernel(%arg0: i32, %arg1: memref<4x128xf32, #tpu.memory_space<vmem>>, %arg2: memref<1x128xf32, #tpu.memory_space<vmem>>, %arg3: memref<1x128xf32, #tpu.memory_space<vmem>>, %arg4: memref<128x4xf32, #tpu.memory_space<vmem>>, %arg5: memref<4x128xf32, #tpu.memory_space<vmem>>, %arg6: memref<4x128xf32, #tpu.memory_space<vmem>>) attributes {dimension_semantics = [#tpu.dimension_semantics<parallel>], iteration_bounds = array<i64: 1>, scalar_prefetch = 0 : i64, scratch_operands = 0 : i64, tpu.core_type = #tpu.core_type<tc>, window_params = [{transform_indices = @transform_0, window_bounds = array<i64: 4, 128>}, {pipeline_mode = #tpu.pipeline_mode<synchronous>, transform_indices = @transform_1, window_bounds = array<i64: 1, 128>}, {pipeline_mode = #tpu.pipeline_mode<synchronous>, transform_indices = @transform_2, window_bounds = array<i64: 1, 128>}, {pipeline_mode = #tpu.pipeline_mode<synchronous>, transform_indices = @transform_3, window_bounds = array<i64: 128, 4>}, {pipeline_mode = #tpu.pipeline_mode<synchronous>, transform_indices = @transform_4, window_bounds = array<i64: 4, 128>}, {transform_indices = @transform_5, window_bounds = array<i64: 4, 128>}]} {
    %c0 = arith.constant 0 : index
    %c0_0 = arith.constant 0 : index
    %0 = vector.load %arg1[%c0, %c0_0] : memref<4x128xf32, #tpu.memory_space<vmem>>, vector<4x128xf32>
    %c0_1 = arith.constant 0 : index
    %c0_2 = arith.constant 0 : index
    %1 = vector.load %arg4[%c0_1, %c0_2] : memref<128x4xf32, #tpu.memory_space<vmem>>, vector<128x4xf32>
    %c0_3 = arith.constant 0 : index
    %c0_4 = arith.constant 0 : index
    %2 = vector.load %arg5[%c0_3, %c0_4] : memref<4x128xf32, #tpu.memory_space<vmem>>, vector<4x128xf32>
    %cst = arith.constant dense<0.000000e+00> : vector<4x4xf32>
    %3 = tpu.matmul %0, %1, %cst {dimension_numbers = #tpu.dot_dimension_numbers<[1], [0], [0], [1], [0, 0, 1, 1], [], []>, precision = #tpu.contract_precision<fp32>} : vector<4x128xf32>, vector<128x4xf32>, vector<4x4xf32> -> vector<4x4xf32>
    %cst_5 = arith.constant 3.125000e-02 : f32
    %4 = vector.broadcast %cst_5 : f32 to vector<4x4xf32>
    %5 = arith.mulf %3, %4 : vector<4x4xf32>
    %cst_6 = arith.constant dense<0.000000e+00> : vector<4x128xf32>
    %6 = tpu.matmul %5, %2, %cst_6 {dimension_numbers = #tpu.dot_dimension_numbers<[1], [0], [0], [1], [0, 0, 1, 1], [], []>, precision = #tpu.contract_precision<fp32>} : vector<4x4xf32>, vector<4x128xf32>, vector<4x128xf32> -> vector<4x128xf32>
    %7 = arith.subf %0, %6 : vector<4x128xf32>
    %8 = arith.mulf %7, %7 : vector<4x128xf32>
    %cst_7 = arith.constant dense<0.000000e+00> : vector<4x4xf32>
    %9 = tpu.matmul %8, %1, %cst_7 {dimension_numbers = #tpu.dot_dimension_numbers<[1], [0], [0], [1], [0, 0, 1, 1], [], []>, precision = #tpu.contract_precision<fp32>} : vector<4x128xf32>, vector<128x4xf32>, vector<4x4xf32> -> vector<4x4xf32>
    %cst_8 = arith.constant 0.0322580636 : f32
    %10 = vector.broadcast %cst_8 : f32 to vector<4x4xf32>
    %11 = arith.mulf %9, %10 : vector<4x4xf32>
    %cst_9 = arith.constant 0.000000e+00 : f32
    %12 = vector.broadcast %cst_9 : f32 to vector<4x4xf32>
    %13 = arith.maximumf %11, %12 : vector<4x4xf32>
    %14 = math.sqrt %13 : vector<4x4xf32>
    %cst_10 = arith.constant 9.99999974E-6 : f32
    %15 = vector.broadcast %cst_10 : f32 to vector<4x4xf32>
    %16 = arith.addf %14, %15 : vector<4x4xf32>
    %17 = tpu.reciprocal %16 : vector<4x4xf32> -> vector<4x4xf32>
    %cst_11 = arith.constant dense<0.000000e+00> : vector<4x128xf32>
    %18 = tpu.matmul %17, %2, %cst_11 {dimension_numbers = #tpu.dot_dimension_numbers<[1], [0], [0], [1], [0, 0, 1, 1], [], []>, precision = #tpu.contract_precision<fp32>} : vector<4x4xf32>, vector<4x128xf32>, vector<4x128xf32> -> vector<4x128xf32>
    %19 = arith.mulf %7, %18 : vector<4x128xf32>
    %c0_12 = arith.constant 0 : index
    %c0_13 = arith.constant 0 : index
    %20 = vector.load %arg2[%c0_12, %c0_13] : memref<1x128xf32, #tpu.memory_space<vmem>>, vector<1x128xf32>
    %21 = vector.broadcast %20 : vector<1x128xf32> to vector<4x128xf32>
    %22 = arith.mulf %19, %21 : vector<4x128xf32>
    %c0_14 = arith.constant 0 : index
    %c0_15 = arith.constant 0 : index
    %23 = vector.load %arg3[%c0_14, %c0_15] : memref<1x128xf32, #tpu.memory_space<vmem>>, vector<1x128xf32>
    %24 = vector.broadcast %23 : vector<1x128xf32> to vector<4x128xf32>
    %25 = arith.addf %22, %24 : vector<4x128xf32>
    %c0_16 = arith.constant 0 : index
    %c0_17 = arith.constant 0 : index
    %26 = vector.load %arg6[%c0_16, %c0_17] : memref<4x128xf32, #tpu.memory_space<vmem>>, vector<4x128xf32>
    tpu.vector_store %arg6[%c0_16, %c0_17], %25 {strides = array<i32>} : memref<4x128xf32, #tpu.memory_space<vmem>>, vector<4x128xf32>,
    return
  }
  func.func @transform_0(%arg0: i32) -> (i32, i32) {
    %c0_i32 = arith.constant 0 : i32
    %c0_i32_0 = arith.constant 0 : i32
    return %arg0, %c0_i32 : i32, i32
  }
  func.func @transform_1(%arg0: i32) -> (i32, i32) {
    %c0_i32 = arith.constant 0 : i32
    %c0_i32_0 = arith.constant 0 : i32
    %c0_i32_1 = arith.constant 0 : i32
    return %c0_i32, %c0_i32_0 : i32, i32
  }
  func.func @transform_2(%arg0: i32) -> (i32, i32) {
    %c0_i32 = arith.constant 0 : i32
    %c0_i32_0 = arith.constant 0 : i32
    %c0_i32_1 = arith.constant 0 : i32
    return %c0_i32, %c0_i32_0 : i32, i32
  }
  func.func @transform_3(%arg0: i32) -> (i32, i32) {
    %c0_i32 = arith.constant 0 : i32
    %c0_i32_0 = arith.constant 0 : i32
    %c0_i32_1 = arith.constant 0 : i32
    return %c0_i32, %c0_i32_0 : i32, i32
  }
  func.func @transform_4(%arg0: i32) -> (i32, i32) {
    %c0_i32 = arith.constant 0 : i32
    %c0_i32_0 = arith.constant 0 : i32
    %c0_i32_1 = arith.constant 0 : i32
    return %c0_i32, %c0_i32_0 : i32, i32
  }
  func.func @transform_5(%arg0: i32) -> (i32, i32) {
    %c0_i32 = arith.constant 0 : i32
    %c0_i32_0 = arith.constant 0 : i32
    return %arg0, %c0_i32 : i32, i32
  }
}

</mosaic_0001>

<bundles_post_ra>
// kernel: tpu_custom_call.1
= control target key start
LH: loop header
LB: loop body
LE: loop exit
PB: predicated region body
PF: predicated region fallthrough
CT: control target
= control target key end

     0   :  { %s1633_s0 = inlined_call_operand.vmem [shape: f32[4,128], index: 0, kind: input, shape index: {}]   ;;  %s1634_s1 = inlined_call_operand.vmem [shape: f32[1,128], index: 1, kind: input, shape index: {}]   ;;  %s1635_s2 = inlined_call_operand.vmem [shape: f32[1,128], index: 2, kind: input, shape index: {}]   ;;  %s1636_s3 = inlined_call_operand.vmem [shape: f32[128,4], index: 3, kind: input, shape index: {}]   ;;  %s1637_s4 = inlined_call_operand.vmem [shape: f32[4,128], index: 4, kind: input, shape index: {}]   ;;  %s1638_s5 = inlined_call_operand.hbm [shape: f32[4,128], index: 5, kind: output, shape index: {}]  }
   0x1   :  { %v37_v0 = vld [vmem:[%s1636_s3 + $0x78] sm:$0xff]  ;;  %v36_v1 = vld [vmem:[%s1636_s3 + $0x70] sm:$0xff]  ;;  %v35_v2 = vld [vmem:[%s1636_s3 + $0x68] sm:$0xff] }
   0x2   :  { %v1157_v3 = vand.u32 4294901760, %v37_v0  ;;  %v1159_v4 = vand.u32 4294901760, %v36_v1  ;;  %v1161_v5 = vand.u32 4294901760, %v35_v2  ;;  %v34_v6 = vld [vmem:[%s1636_s3 + $0x60] sm:$0xff]  ;;  %v33_v7 = vld [vmem:[%s1636_s3 + $0x58] sm:$0xff]  ;;  %v32_v8 = vld [vmem:[%s1636_s3 + $0x50] sm:$0xff] }
   0x3   :  { %v1172_v9 = vand.u32 4294901760, %v34_v6  ;;  %v1174_v10 = vand.u32 4294901760, %v33_v7  ;;  %v1176_v11 = vand.u32 4294901760, %v32_v8  ;;  %v31_v12 = vld [vmem:[%s1636_s3 + $0x48] sm:$0xff]  ;;  %v30_v13 = vld [vmem:[%s1636_s3 + $0x40] sm:$0xff]  ;;  %v29_v18 = vld [vmem:[%s1636_s3 + $0x38] sm:$0xff] }
   0x4   :  { %40 = vmatpush.msra.mxu0 %v1157_v3  ;;  %v1186_v14 = vsub.f32 %v37_v0, %v1157_v3  ;;  %v1189_v15 = vsub.f32 %v36_v1, %v1159_v4  ;;  %v1192_v16 = vsub.f32 %v35_v2, %v1161_v5  ;;  %v1194_v17 = vand.u32 4294901760, %v31_v12  ;;  %236 = vmatpush.msra.mxu3 %v1157_v3  ;;  %v28_v26 = vld [vmem:[%s1636_s3 + $0x30] sm:$0xff] }
   0x5   :  { %v1201_v19 = vsub.f32 %v34_v6, %v1172_v9  ;;  %v1204_v20 = vsub.f32 %v33_v7, %v1174_v10  ;;  %v1207_v21 = vsub.f32 %v32_v8, %v1176_v11  ;;  %v1219_v25 = vand.u32 4294901760, %v30_v13 }
   0x6   :  { %42 = vmatpush.msra.mxu0 %v1159_v4  ;;  %v1211_v22 = vand.u32 4294901760, %v1186_v14  ;;  %v1214_v23 = vand.u32 4294901760, %v1189_v15  ;;  %v1217_v24 = vand.u32 4294901760, %v1192_v16  ;;  %183 = vmatpush.msra.mxu2 %v1186_v14  ;;  %v1228_v28 = vand.u32 4294901760, %v29_v18 }
   0x7   :  { %v1226_v27 = vand.u32 4294901760, %v1201_v19  ;;  %v1231_v29 = vsub.f32 %v31_v12, %v1194_v17  ;;  %238 = vmatpush.msra.mxu3 %v1159_v4 }
   0x8   :  { %10 = vsyncpa [#allocation3], 0  ;;  %44 = vmatpush.msra.mxu0 %v1161_v5  ;;  %v83_v30 = vsub.f32 %v1186_v14, %v1211_v22  ;;  %v89_v31 = vsub.f32 %v1189_v15, %v1214_v23  ;;  %v95_v32 = vsub.f32 %v1192_v16, %v1217_v24  ;;  %v1242_v33 = vand.u32 4294901760, %v1204_v20  ;;  %186 = vmatpush.msra.mxu2 %v1189_v15  ;;  %v27_v36 = vld [vmem:[%s1636_s3 + $0x28] sm:$0xff]  ;;  %v26_v42 = vld [vmem:[%s1636_s3 + $0x20] sm:$0xff]  ;;  %s1117_s30 = smov [#allocation2]  }
   0x9   :  { %v1246_v34 = vand.u32 4294901760, %v1207_v21  ;;  %v1248_v35 = vand.u32 4294901760, %v28_v26  ;;  %240 = vmatpush.msra.mxu3 %v1161_v5  ;;  %v101_v39 = vsub.f32 %v1201_v19, %v1226_v27  ;;  %v1262_v40 = vsub.f32 %v30_v13, %v1219_v25  ;;  %v25_v47 = vld [vmem:[%s1636_s3 + $0x18] sm:$0xff]  ;;  %v24_v55 = vld [vmem:[%s1636_s3 + $0x10] sm:$0xff]  ;;  %v23_v60 = vld [vmem:[%s1636_s3 + $0x8] sm:$0xff]  ;;  %s1073_s6 = sshll.u32 %s1117_s30, 4  ;;  %s1074_s6 = int_to_ptr.vmem [resolvable:$true] %s1073_s6 }
   0xa   :  { %v1254_v37 = vand.u32 4294901760, %v83_v30  ;;  %46 = vmatpush.msra.mxu0 %v1172_v9  ;;  %v1257_v38 = vand.u32 4294901760, %v89_v31  ;;  %189 = vmatpush.msra.mxu2 %v1192_v16  ;;  %v1266_v41 = vand.u32 4294901760, %v1231_v29  ;;  %v1274_v43 = vand.u32 4294901760, %v95_v32  ;;  %v22_v1 = vld [vmem:[%s1636_s3] sm:$0xff]  ;;  %s1075_s9 = sshll.u32 %s1638_s5, 4  ;;  %s1076_s9 = int_to_ptr.hbm [resolvable:$true] %s1075_s9 }
   0xb   :  { %242 = vmatpush.msra.mxu3 %v1172_v9  ;;  %v107_v44 = vsub.f32 %v1204_v20, %v1242_v33  ;;  %v1278_v45 = vand.u32 4294901760, %v27_v36  ;;  %v1281_v46 = vsub.f32 %v29_v18, %v1228_v28  ;;  %v113_v48 = vsub.f32 %v1207_v21, %v1246_v34  ;;  %v1353_v7 = vld [vmem:[%s1633_s0] sm:$0xf] }
   0xc   :  { %85 = vmatpush.msra.mxu1 %v1254_v37  ;;  %48 = vmatpush.msra.mxu0 %v1174_v10  ;;  %v1292_v49 = vand.u32 4294901760, %v101_v39  ;;  %v1295_v50 = vand.u32 4294901760, %v1262_v40  ;;  %v1297_v51 = vand.u32 4294901760, %v26_v42  ;;  %v1300_v52 = vsub.f32 %v28_v26, %v1248_v35  ;;  %1650 = vst [vmem:[#allocation8_spill] sm:$0xff] %v1353_v7 }
   0xd   :  { %192 = vmatpush.msra.mxu2 %v1201_v19  ;;  %244 = vmatpush.msra.mxu3 %v1174_v10  ;;  %v119_v53 = vsub.f32 %v1231_v29, %v1266_v41  ;;  %v1304_v54 = vand.u32 4294901760, %v25_v47  ;;  %v1313_v56 = vand.u32 4294901760, %v107_v44  ;;  %v1316_v57 = vand.u32 4294901760, %v1281_v46 }
   0xe   :  { %91 = vmatpush.msra.mxu1 %v1257_v38  ;;  %50 = vmatpush.msra.mxu0 %v1176_v11  ;;  %v1319_v58 = vsub.f32 %v27_v36, %v1278_v45  ;;  %v1321_v59 = vand.u32 4294901760, %v113_v48  ;;  %v125_v61 = vsub.f32 %v1262_v40, %v1295_v50  ;;  %v1333_v62 = vand.u32 4294901760, %v1300_v52 }
   0xf   :  { %195 = vmatpush.msra.mxu2 %v1204_v20  ;;  %246 = vmatpush.msra.mxu3 %v1176_v11  ;;  %1647 = vst [vmem:[#allocation5_spill] sm:$0xff] %v1313_v56  ;;  %v1335_v63 = vand.u32 4294901760, %v24_v55  ;;  %v1338_v0 = vsub.f32 %v26_v42, %v1297_v51  ;;  %v1343_v2 = vand.u32 4294901760, %v119_v53  ;;  %v1346_v6 = vsub.f32 %v25_v47, %v1304_v54 }
  0x10   :  { %97 = vmatpush.msra.mxu1 %v1274_v43  ;;  %52 = vmatpush.msra.mxu0 %v1194_v17  ;;  %1648 = vst [vmem:[#allocation6_spill] sm:$0xff] %v1321_v59  ;;  %v131_v8 = vsub.f32 %v1281_v46, %v1316_v57  ;;  %v1360_v12 = vand.u32 4294901760, %v1319_v58  ;;  %v1362_v13 = vand.u32 4294901760, %v23_v60  ;;  %v1365_v18 = vand.u32 4294901760, %v1353_v7 }
  0x11   :  { %198 = vmatpush.msra.mxu2 %v1207_v21  ;;  %248 = vmatpush.msra.mxu3 %v1194_v17  ;;  %1649 = vst [vmem:[#allocation7_spill] sm:$0xff] %v1343_v2  ;;  %v1367_v26 = vand.u32 4294901760, %v22_v1  ;;  %v1373_v30 = vand.u32 4294901760, %v125_v61  ;;  %v137_v31 = vsub.f32 %v1300_v52, %v1333_v62  ;;  %v1378_v32 = vand.u32 4294901760, %v1338_v0 }
  0x12   :  { %103 = vmatpush.msra.mxu1 %v1292_v49  ;;  %54 = vmatpush.msra.mxu0 %v1219_v25  ;;  %v1381_v36 = vsub.f32 %v24_v55, %v1335_v63  ;;  %v1384_v39 = vand.u32 4294901760, %v1346_v6  ;;  %v1390_v42 = vand.u32 4294901760, %v131_v8  ;;  %v143_v44 = vsub.f32 %v1319_v58, %v1360_v12 }
  0x13   :  { %201 = vmatpush.msra.mxu2 %v1231_v29  ;;  %250 = vmatpush.msra.mxu3 %v1219_v25  ;;  %1651 = vst [vmem:[#allocation9_spill] sm:$0xff] %v1373_v30  ;;  %v1395_v47 = vsub.f32 %v23_v60, %v1362_v13  ;;  %v72_v48 = vsub.f32 %v1353_v7, %v1365_v18  ;;  %v1403_v53 = vand.u32 4294901760, %v137_v31  ;;  %vm385_vm0 = vcmask 1043456  }
  0x14   :  { %109 = vmatpush.msra.mxu1 %v1313_v56  ;;  %56 = vmatpush.msra.mxu0 %v1228_v28  ;;  %1652 = vst [vmem:[#allocation10_spill] sm:$0xff] %v1390_v42  ;;  %v149_v55 = vsub.f32 %v1338_v0, %v1378_v32  ;;  %v1408_v61 = vand.u32 4294901760, %v1381_v36  ;;  %v1411_v60 = vsub.f32 %v22_v1, %v1367_v26  ;;  %v1417_v8 = vand.u32 4294901760, %v143_v44 }
  0x15   :  { %204 = vmatpush.msra.mxu2 %v1262_v40  ;;  %252 = vmatpush.msra.mxu3 %v1228_v28  ;;  %1653 = vst [vmem:[#allocation11_spill] sm:$0xff] %v1403_v53  ;;  %v155_v31 = vsub.f32 %v1346_v6, %v1384_v39  ;;  %v1422_v7 = vand.u32 4294901760, %v1395_v47  ;;  %vm381_vm1 = vcmask 31744  }
  0x16   :  { %115 = vmatpush.msra.mxu1 %v1321_v59  ;;  %58 = vmatpush.msra.mxu0 %v1248_v35  ;;  %1654 = vst [vmem:[#allocation12_spill] sm:$0xff] %v1417_v8  ;;  %v1428_v1 = vand.u32 4294901760, %v149_v55  ;;  %v161_v44 = vsub.f32 %v1381_v36, %v1408_v61 }
  0x17   :  { %207 = vmatpush.msra.mxu2 %v1281_v46  ;;  %254 = vmatpush.msra.mxu3 %v1248_v35  ;;  %v167_v55 = vsub.f32 %v1395_v47, %v1422_v7 }
  0x18   :  { %121 = vmatpush.msra.mxu1 %v1343_v2  ;;  %60 = vmatpush.msra.mxu0 %v1278_v45  ;;  %v1439_v2 = vand.u32 4294901760, %v155_v31  ;;  %v1447_v59 = vand.u32 4294901760, %v161_v44 }
  0x19   :  { %210 = vmatpush.msra.mxu2 %v1300_v52  ;;  %256 = vmatpush.msra.mxu3 %v1278_v45  ;;  %v1454_v31 = vand.u32 4294901760, %v167_v55 }
  0x1a   :  { %127 = vmatpush.msra.mxu1 %v1373_v30  ;;  %62 = vmatpush.msra.mxu0 %v1297_v51  ;;  %v73_v30 = vand.u32 4294901760, %v72_v48 }
  0x1b   :  { %213 = vmatpush.msra.mxu2 %v1319_v58  ;;  %258 = vmatpush.msra.mxu3 %v1297_v51 }
  0x1c   :  { %133 = vmatpush.msra.mxu1 %v1390_v42  ;;  %64 = vmatpush.msra.mxu0 %v1304_v54  ;;  %v1433_v42 = vand.u32 4294901760, %v1411_v60 }
  0x1d   :  { %216 = vmatpush.msra.mxu2 %v1338_v0  ;;  %260 = vmatpush.msra.mxu3 %v1304_v54 }
  0x1e   :  { %139 = vmatpush.msra.mxu1 %v1403_v53  ;;  %66 = vmatpush.msra.mxu0 %v1335_v63  ;;  %v74_v53 = vsub.f32 %v72_v48, %v73_v30 }
  0x1f   :  { %219 = vmatpush.msra.mxu2 %v1346_v6  ;;  %262 = vmatpush.msra.mxu3 %v1335_v63 }
  0x20   :  { %145 = vmatpush.msra.mxu1 %v1417_v8  ;;  %68 = vmatpush.msra.mxu0 %v1362_v13  ;;  %v173_v8 = vsub.f32 %v1411_v60, %v1433_v42  ;;  %v75_v56 = vand.u32 4294901760, %v74_v53 }
  0x21   :  { %222 = vmatpush.msra.mxu2 %v1381_v36  ;;  %264 = vmatpush.msra.mxu3 %v1362_v13 }
  0x22   :  { %151 = vmatpush.msra.mxu1 %v1428_v1  ;;  %70 = vmatpush.msra.mxu0 %v1367_v26  ;;  %v1460_v44 = vand.u32 4294901760, %v173_v8 }
  0x23   :  { %225 = vmatpush.msra.mxu2 %v1395_v47  ;;  %266 = vmatpush.msra.mxu3 %v1367_v26 }
  0x24   :  { %277 = vmatpush.msrb.mxu0 %v1211_v22  ;;  %157 = vmatpush.msra.mxu1 %v1439_v2 }
  0x25   :  { %228 = vmatpush.msra.mxu2 %v1411_v60  ;;  %270 = vmatmul.f32.vlgmr.msra.gmra.mxu3 %v73_v30 }
  0x26   :  { %281 = vmatpush.msrb.mxu0 %v1214_v23  ;;  %163 = vmatpush.msra.mxu1 %v1447_v59 }
  0x27   :  { %231 = vmatmul.f32.vlgmr.msra.gmra.mxu2 %v72_v48  ;;  %76 = vmatmul.f32.vlgmr.msra.gmra.mxu0 %v75_v56 }
  0x28   :  { %285 = vmatpush.msrb.mxu0 %v1217_v24  ;;  %169 = vmatpush.msra.mxu1 %v1454_v31 }
  0x2a   :  { %289 = vmatpush.msrb.mxu0 %v1226_v27  ;;  %175 = vmatpush.msra.mxu1 %v1460_v44 }
  0x2b   :  { %177 = vmatmul.f32.vlgmr.msra.gmra.mxu1 %v1365_v18 }
  0x2c   :  { %344 = vmatpush.msrb.mxu1 %v1157_v3  ;;  %293 = vmatpush.msrb.mxu0 %v1242_v33 }
  0x2e   :  { %346 = vmatpush.msrb.mxu1 %v1159_v4  ;;  %297 = vmatpush.msrb.mxu0 %v1246_v34 }
  0x30   :  { %348 = vmatpush.msrb.mxu1 %v1161_v5  ;;  %301 = vmatpush.msrb.mxu0 %v1266_v41 }
  0x32   :  { %350 = vmatpush.msrb.mxu1 %v1172_v9  ;;  %305 = vmatpush.msrb.mxu0 %v1295_v50 }
  0x34   :  { %352 = vmatpush.msrb.mxu1 %v1174_v10  ;;  %309 = vmatpush.msrb.mxu0 %v1316_v57 }
  0x36   :  { %354 = vmatpush.msrb.mxu1 %v1176_v11  ;;  %313 = vmatpush.msrb.mxu0 %v1333_v62 }
  0x38   :  { %356 = vmatpush.msrb.mxu1 %v1194_v17  ;;  %317 = vmatpush.msrb.mxu0 %v1360_v12 }
  0x3a   :  { %358 = vmatpush.msrb.mxu1 %v1219_v25  ;;  %321 = vmatpush.msrb.mxu0 %v1378_v32 }
  0x3c   :  { %360 = vmatpush.msrb.mxu1 %v1228_v28  ;;  %325 = vmatpush.msrb.mxu0 %v1384_v39 }
  0x3e   :  { %362 = vmatpush.msrb.mxu1 %v1248_v35  ;;  %329 = vmatpush.msrb.mxu0 %v1408_v61 }
  0x40   :  { %364 = vmatpush.msrb.mxu1 %v1278_v45  ;;  %333 = vmatpush.msrb.mxu0 %v1422_v7 }
  0x42   :  { %366 = vmatpush.msrb.mxu1 %v1297_v51  ;;  %337 = vmatpush.msrb.mxu0 %v1433_v42 }
  0x43   :  { %339 = vmatmul.f32.vlgmr.msrb.gmra.mxu0 %v1365_v18 }
  0x44   :  { %368 = vmatpush.msrb.mxu1 %v1304_v54  ;;  %681 = vmatpush.msra.mxu0 %v1186_v14  ;;  %v38_v14 = vld [vmem:[%s1637_s4] sm:$0xf] }
  0x46   :  { %370 = vmatpush.msrb.mxu1 %v1335_v63  ;;  %684 = vmatpush.msra.mxu0 %v1189_v15  ;;  %v387_v15 = vsel %vm385_vm0, %v38_v14, 0 }
  0x48   :  { %372 = vmatpush.msrb.mxu1 %v1362_v13  ;;  %687 = vmatpush.msra.mxu0 %v1192_v16  ;;  %v1532_v16 = vand.u32 4294901760, %v387_v15 }
  0x4a   :  { %374 = vmatpush.msrb.mxu1 %v1367_v26  ;;  %690 = vmatpush.msra.mxu0 %v1201_v19  ;;  %v1535_v19 = vsub.f32 %v387_v15, %v1532_v16 }
  0x4b   :  { %376 = vmatmul.f32.vlgmr.msrb.gmra.mxu1 %v1365_v18  ;;  %405 = vmatpush.msrb.mxu2 %v1532_v16 }
  0x4c   :  { %734 = vmatpush.msra.mxu1 %v1157_v3  ;;  %693 = vmatpush.msra.mxu0 %v1204_v20  ;;  %v1540_v20 = vand.u32 4294901760, %v1535_v19 }
  0x4d   :  { %458 = vmatpush.msra.mxu2 %v1535_v19 }
  0x4e   :  { %736 = vmatpush.msra.mxu1 %v1159_v4  ;;  %696 = vmatpush.msra.mxu0 %v1207_v21  ;;  %v433_v21 = vsub.f32 %v1535_v19, %v1540_v20 }
  0x50   :  { %738 = vmatpush.msra.mxu1 %v1161_v5  ;;  %699 = vmatpush.msra.mxu0 %v1231_v29  ;;  %v434_v29 = vand.u32 4294901760, %v433_v21  ;;  %v1655_v21 = vld [vmem:[#allocation5_spill] sm:$0xff] }
  0x52   :  { %740 = vmatpush.msra.mxu1 %v1172_v9  ;;  %702 = vmatpush.msra.mxu0 %v1262_v40 }
  0x53   :  { %435 = vmatpush.msrb.mxu3 %v434_v29 }
  0x54   :  { %742 = vmatpush.msra.mxu1 %v1174_v10  ;;  %705 = vmatpush.msra.mxu0 %v1281_v46 }
  0x55   :  { %481 = vmatpush.msra.mxu3 %v1532_v16 }
  0x56   :  { %744 = vmatpush.msra.mxu1 %v1176_v11  ;;  %708 = vmatpush.msra.mxu0 %v1300_v52 }
  0x58   :  { %746 = vmatpush.msra.mxu1 %v1194_v17  ;;  %711 = vmatpush.msra.mxu0 %v1319_v58 }
  0x5a   :  { %748 = vmatpush.msra.mxu1 %v1219_v25  ;;  %714 = vmatpush.msra.mxu0 %v1338_v0 }
  0x5c   :  { %750 = vmatpush.msra.mxu1 %v1228_v28  ;;  %717 = vmatpush.msra.mxu0 %v1346_v6 }
  0x5e   :  { %752 = vmatpush.msra.mxu1 %v1248_v35  ;;  %720 = vmatpush.msra.mxu0 %v1381_v36 }
  0x60   :  { %754 = vmatpush.msra.mxu1 %v1278_v45  ;;  %723 = vmatpush.msra.mxu0 %v1395_v47 }
  0x62   :  { %756 = vmatpush.msra.mxu1 %v1297_v51  ;;  %726 = vmatpush.msra.mxu0 %v1411_v60 }
  0x64   :  { %758 = vmatpush.msra.mxu1 %v1304_v54  ;;  %926 = vmatpush.msrb.mxu0 %v1532_v16 }
  0x66   :  { %760 = vmatpush.msra.mxu1 %v1335_v63 }
  0x68   :  { %762 = vmatpush.msra.mxu1 %v1362_v13 }
  0x6a   :  { %764 = vmatpush.msra.mxu1 %v1367_v26 }
  0x6c   :  { %956 = vmatpush.msrb.mxu1 %v434_v29  ;;  %v1656_v29 = vld [vmem:[#allocation6_spill] sm:$0xff] }
  0xa4   :  { %v77_v46 = vpop.f32.mrf.mxu0 }
  0xa8   :  { %v178_v40 = vpop.f32.mrf.mxu1  ;;  %v271_v0 = vpop.f32.mrf.mxu3 }
  0xa9   :  { %v179_v52 = vadd.f32 %v178_v40, %v77_v46  ;;  %v1657_v40 = vld [vmem:[#allocation7_spill] sm:$0xff] }
  0xaa   :  { %v232_v56 = vpop.f32.mrf.mxu2 }
  0xab   :  { %v233_v58 = vadd.f32 %v232_v56, %v179_v52 }
  0xad   :  { %v272_v6 = vadd.f32 %v271_v0, %v233_v58 }
  0xc0   :  { %v340_v18 = vpop.f32.mrf.mxu0 }
  0xc1   :  { %v341_v30 = vadd.f32 %v340_v18, %v272_v6 }
  0xc8   :  { %v377_v36 = vpop.f32.mrf.mxu1 }
  0xc9   :  { %v378_v47 = vadd.f32 %v377_v36, %v341_v30 }
  0xcb   :  { %v380_v48 = vmul.f32 0.03125, %v378_v47 }
  0xcd   :  { %v383_v53 = vsel %vm381_vm1, %v380_v48, 0 }
  0xce   :  { %v406_v60 = vand.u32 4294901760, %v383_v53 }
  0xd0   :  { %v407_v8 = vsub.f32 %v383_v53, %v406_v60  ;;  %437 = vmatmul.f32.vlgmr.msrb.gmra.mxu3 %v406_v60 }
  0xd1   :  { %529 = vmatpush.msrb.mxu3 %v1532_v16 }
  0xd2   :  { %v408_v55 = vand.u32 4294901760, %v407_v8 }
  0xd4   :  { %v409_v14 = vsub.f32 %v407_v8, %v408_v55 }
  0xd6   :  { %v410_v15 = vand.u32 4294901760, %v409_v14 }
  0xd8   :  { %411 = vmatmul.f32.vlgmr.msrb.gmra.mxu2 %v410_v15  ;;  %485 = vmatmul.f32.vlgmr.msra.gmra.mxu3 %v408_v55 }
  0xd9   :  { %507 = vmatpush.msrb.mxu2 %v1540_v20  ;;  %583 = vmatpush.msra.mxu3 %v1254_v37  ;;  %v1658_v37 = vld [vmem:[#allocation9_spill] sm:$0xff] }
  0xdb   :  { %589 = vmatpush.msra.mxu3 %v1257_v38  ;;  %v1659_v38 = vld [vmem:[#allocation10_spill] sm:$0xff] }
  0xdd   :  { %595 = vmatpush.msra.mxu3 %v1274_v43  ;;  %v1660_v43 = vld [vmem:[#allocation11_spill] sm:$0xff] }
  0xdf   :  { %601 = vmatpush.msra.mxu3 %v1292_v49  ;;  %v1661_v49 = vld [vmem:[#allocation12_spill] sm:$0xff] }
  0xe0   :  { %461 = vmatmul.f32.vlgmr.msra.gmra.mxu2 %v407_v8  ;;  %531 = vmatmul.f32.vlgmr.msrb.gmra.mxu3 %v406_v60 }
  0xe1   :  { %538 = vmatpush.msra.mxu2 %v1157_v3  ;;  %607 = vmatpush.msra.mxu3 %v1655_v21 }
  0xe3   :  { %540 = vmatpush.msra.mxu2 %v1159_v4  ;;  %613 = vmatpush.msra.mxu3 %v1656_v29 }
  0xe5   :  { %542 = vmatpush.msra.mxu2 %v1161_v5  ;;  %619 = vmatpush.msra.mxu3 %v1657_v40 }
  0xe7   :  { %544 = vmatpush.msra.mxu2 %v1172_v9  ;;  %625 = vmatpush.msra.mxu3 %v1658_v37 }
  0xe8   :  { %509 = vmatmul.f32.vlgmr.msrb.gmra.mxu2 %v406_v60 }
  0xe9   :  { %546 = vmatpush.msra.mxu2 %v1174_v10  ;;  %631 = vmatpush.msra.mxu3 %v1659_v38 }
  0xeb   :  { %548 = vmatpush.msra.mxu2 %v1176_v11  ;;  %637 = vmatpush.msra.mxu3 %v1660_v43 }
  0xed   :  { %550 = vmatpush.msra.mxu2 %v1194_v17  ;;  %643 = vmatpush.msra.mxu3 %v1661_v49 }
  0xef   :  { %552 = vmatpush.msra.mxu2 %v1219_v25  ;;  %649 = vmatpush.msra.mxu3 %v1428_v1 }
  0xf1   :  { %554 = vmatpush.msra.mxu2 %v1228_v28  ;;  %655 = vmatpush.msra.mxu3 %v1439_v2 }
  0xf3   :  { %556 = vmatpush.msra.mxu2 %v1248_v35  ;;  %661 = vmatpush.msra.mxu3 %v1447_v59 }
  0xf5   :  { %558 = vmatpush.msra.mxu2 %v1278_v45  ;;  %667 = vmatpush.msra.mxu3 %v1454_v31 }
  0xf7   :  { %560 = vmatpush.msra.mxu2 %v1297_v51  ;;  %673 = vmatpush.msra.mxu3 %v1460_v44 }
  0xf9   :  { %842 = vmatpush.msrb.mxu3 %v1157_v3  ;;  %562 = vmatpush.msra.mxu2 %v1304_v54 }
  0xfb   :  { %844 = vmatpush.msrb.mxu3 %v1159_v4  ;;  %564 = vmatpush.msra.mxu2 %v1335_v63 }
  0xfd   :  { %846 = vmatpush.msrb.mxu3 %v1161_v5  ;;  %566 = vmatpush.msra.mxu2 %v1362_v13 }
  0xff   :  { %848 = vmatpush.msrb.mxu3 %v1172_v9  ;;  %568 = vmatpush.msra.mxu2 %v1367_v26 }
 0x101   :  { %775 = vmatpush.msrb.mxu2 %v1211_v22  ;;  %850 = vmatpush.msrb.mxu3 %v1174_v10 }
 0x103   :  { %779 = vmatpush.msrb.mxu2 %v1214_v23  ;;  %852 = vmatpush.msrb.mxu3 %v1176_v11 }
 0x105   :  { %783 = vmatpush.msrb.mxu2 %v1217_v24  ;;  %854 = vmatpush.msrb.mxu3 %v1194_v17 }
 0x107   :  { %787 = vmatpush.msrb.mxu2 %v1226_v27  ;;  %856 = vmatpush.msrb.mxu3 %v1219_v25  ;;  %v1662_v27 = vld [vmem:[#allocation8_spill] sm:$0xff] }
 0x109   :  { %791 = vmatpush.msrb.mxu2 %v1242_v33  ;;  %858 = vmatpush.msrb.mxu3 %v1228_v28 }
 0x10b   :  { %795 = vmatpush.msrb.mxu2 %v1246_v34  ;;  %860 = vmatpush.msrb.mxu3 %v1248_v35 }
 0x10d   :  { %799 = vmatpush.msrb.mxu2 %v1266_v41  ;;  %862 = vmatpush.msrb.mxu3 %v1278_v45 }
 0x10f   :  { %803 = vmatpush.msrb.mxu2 %v1295_v50  ;;  %864 = vmatpush.msrb.mxu3 %v1297_v51 }
 0x111   :  { %807 = vmatpush.msrb.mxu2 %v1316_v57  ;;  %866 = vmatpush.msrb.mxu3 %v1304_v54 }
 0x113   :  { %811 = vmatpush.msrb.mxu2 %v1333_v62  ;;  %868 = vmatpush.msrb.mxu3 %v1335_v63 }
 0x115   :  { %815 = vmatpush.msrb.mxu2 %v1360_v12  ;;  %870 = vmatpush.msrb.mxu3 %v1362_v13 }
 0x117   :  { %819 = vmatpush.msrb.mxu2 %v1378_v32  ;;  %872 = vmatpush.msrb.mxu3 %v1367_v26 }
 0x119   :  { %823 = vmatpush.msrb.mxu2 %v1384_v39 }
 0x11b   :  { %827 = vmatpush.msrb.mxu2 %v1408_v61 }
 0x11d   :  { %831 = vmatpush.msrb.mxu2 %v1422_v7 }
 0x11f   :  { %835 = vmatpush.msrb.mxu2 %v1433_v42 }
 0x153   :  { %v438_v3 = vpop.f32.mrf.mxu3 }
 0x15b   :  { %v412_v4 = vpop.f32.mrf.mxu2  ;;  %v486_v5 = vpop.f32.mrf.mxu3 }
 0x15c   :  { %v439_v10 = vadd.f32 %v438_v3, %v412_v4 }
 0x163   :  { %v462_v9 = vpop.f32.mrf.mxu2  ;;  %v532_v24 = vpop.f32.mrf.mxu3 }
 0x164   :  { %v463_v11 = vadd.f32 %v462_v9, %v439_v10 }
 0x166   :  { %v487_v17 = vadd.f32 %v486_v5, %v463_v11 }
 0x16b   :  { %v510_v22 = vpop.f32.mrf.mxu2 }
 0x16c   :  { %v511_v23 = vadd.f32 %v510_v22, %v487_v17  ;;  %v1085_v22 = vld [vmem:[%s1634_s1] ss:$0 sm:$0xff] }
 0x16e   :  { %v533_v25 = vadd.f32 %v532_v24, %v511_v23  ;;  %v1086_v23 = vld [vmem:[%s1635_s2] ss:$0 sm:$0xff] }
 0x170   :  { %v1614_v28 = vsub.f32 %v1662_v27, %v533_v25 }
 0x172   :  { %v536_v33 = vmul.f32 %v1614_v28, %v1614_v28 }
 0x174   :  { %v569_v34 = vand.u32 4294901760, %v536_v33 }
 0x176   :  { %675 = vmatmul.f32.vlgmr.msra.gmra.mxu3 %v569_v34  ;;  %v570_v35 = vsub.f32 %v536_v33, %v569_v34 }
 0x178   :  { %729 = vmatmul.f32.vlgmr.msra.gmra.mxu0 %v570_v35  ;;  %v571_v41 = vand.u32 4294901760, %v570_v35 }
 0x179   :  { %979 = vmatpush.msra.mxu0 %v1535_v19 }
 0x17a   :  { %768 = vmatmul.f32.vlgmr.msra.gmra.mxu1 %v571_v41  ;;  %v572_v45 = vsub.f32 %v570_v35, %v571_v41 }
 0x17b   :  { %1002 = vmatpush.msra.mxu1 %v1532_v16 }
 0x17c   :  { %v573_v50 = vand.u32 4294901760, %v572_v45 }
 0x17e   :  { %574 = vmatmul.f32.vlgmr.msra.gmra.mxu2 %v573_v50  ;;  %874 = vmatmul.f32.vlgmr.msrb.gmra.mxu3 %v569_v34 }
 0x186   :  { %837 = vmatmul.f32.vlgmr.msrb.gmra.mxu2 %v569_v34 }
 0x1f5   :  { %v730_v59 = vpop.f32.mrf.mxu0 }
 0x1f7   :  { %v769_v63 = vpop.f32.mrf.mxu1 }
 0x1f9   :  { %v676_v51 = vpop.f32.mrf.mxu3 }
 0x201   :  { %v575_v54 = vpop.f32.mrf.mxu2  ;;  %v875_v13 = vpop.f32.mrf.mxu3 }
 0x202   :  { %v677_v57 = vadd.f32 %v676_v51, %v575_v54 }
 0x204   :  { %v731_v62 = vadd.f32 %v730_v59, %v677_v57 }
 0x206   :  { %v770_v2 = vadd.f32 %v769_v63, %v731_v62 }
 0x209   :  { %v838_v7 = vpop.f32.mrf.mxu2 }
 0x20a   :  { %v839_v12 = vadd.f32 %v838_v7, %v770_v2 }
 0x20c   :  { %v876_v26 = vadd.f32 %v875_v13, %v839_v12 }
 0x20e   :  { %v878_v32 = vmul.f32 0.032258064, %v876_v26 }
 0x210   :  { %v879_v39 = vmax.f32 %v878_v32, 0.0 }
 0x212   :  { %1087 = vrsqrt.f32 %v879_v39  ;;  %vm887_vm2 = vcmp.eq.f32.partialorder %v879_v39, inf  ;;  %v890_v52 = vand.u32 2147483648, %v879_v39  ;;  %vm889_vm3 = vcmp.eq.f32.partialorder %v879_v39, 0.0 }
 0x218   :  { %v1088_v42 = vpop.eup %1087 }
 0x219   :  { %v881_v61 = vmul.f32 %v1088_v42, %v879_v39 }
 0x21b   :  { %v882_v1 = vmul.f32 %v1088_v42, %v881_v61 }
 0x21d   :  { %v883_v31 = vmul.f32 0.5, %v882_v1 }
 0x21f   :  { %v884_v44 = vsub.f32 1.5, %v883_v31 }
 0x221   :  { %v885_v19 = vmul.f32 %v1088_v42, %v884_v44 }
 0x223   :  { %v886_v46 = vmul.f32 %v885_v19, %v879_v39 }
 0x225   :  { %v888_v56 = vsel %vm887_vm2, %v879_v39, %v886_v46 }
 0x226   :  { %v891_v58 = vsel %vm889_vm3, %v890_v52, %v888_v56 }
 0x227   :  { %v892_v0 = vadd.f32 1e-05, %v891_v58 }
 0x229   :  { %1089 = vrcp.f32 %v892_v0  ;;  %v904_v36 = vand.u32 2147483648, %v892_v0  ;;  %v902_v48 = vand.u32 2147483647, %v892_v0  ;;  %vm898_vm5 = vweird.f32 %v892_v0 }
 0x22b   :  { %v905_v60 = vor.u32 1.1754944e-38, %v904_v36  ;;  %vm903_vm7 = vcmp.eq.f32.partialorder %v902_v48, 8.507059e+37 }
 0x22f   :  { %v1090_v6 = vpop.eup %1089 }
 0x230   :  { %v894_v18 = vmul.f32 %v1090_v6, %v892_v0  ;;  %vm899_vm4 = vweird.f32 %v1090_v6 }
 0x231   :  { %vm900_vm6 = vmor %vm898_vm5, %vm899_vm4 }
 0x232   :  { %v895_v30 = vsub.f32 1.0, %v894_v18 }
 0x234   :  { %v896_v47 = vmul.f32 %v1090_v6, %v895_v30 }
 0x236   :  { %v897_v53 = vadd.f32 %v1090_v6, %v896_v47 }
 0x238   :  { %v901_v8 = vsel %vm900_vm6, %v1090_v6, %v897_v53 }
 0x239   :  { %v906_v55 = vsel %vm903_vm7, %v905_v60, %v901_v8 }
 0x23a   :  { %v908_v14 = vsel %vm381_vm1, %v906_v55, 0 }
 0x23b   :  { %v927_v15 = vand.u32 4294901760, %v908_v14 }
 0x23d   :  { %v928_v21 = vsub.f32 %v908_v14, %v927_v15  ;;  %958 = vmatmul.f32.vlgmr.msrb.gmra.mxu1 %v927_v15 }
 0x23e   :  { %1050 = vmatpush.msrb.mxu1 %v1532_v16 }
 0x23f   :  { %v929_v29 = vand.u32 4294901760, %v928_v21 }
 0x241   :  { %v930_v40 = vsub.f32 %v928_v21, %v929_v29 }
 0x243   :  { %v931_v37 = vand.u32 4294901760, %v930_v40 }
 0x245   :  { %932 = vmatmul.f32.vlgmr.msrb.gmra.mxu0 %v931_v37  ;;  %1006 = vmatmul.f32.vlgmr.msra.gmra.mxu1 %v929_v29 }
 0x246   :  { %1028 = vmatpush.msrb.mxu0 %v1540_v20 }
 0x24d   :  { %982 = vmatmul.f32.vlgmr.msra.gmra.mxu0 %v928_v21  ;;  %1052 = vmatmul.f32.vlgmr.msrb.gmra.mxu1 %v927_v15 }
 0x255   :  { %1030 = vmatmul.f32.vlgmr.msrb.gmra.mxu0 %v927_v15 }
 0x2ba   :  { %v959_v38 = vpop.f32.mrf.mxu1 }
 0x2c2   :  { %v933_v43 = vpop.f32.mrf.mxu0  ;;  %v1007_v49 = vpop.f32.mrf.mxu1 }
 0x2c3   :  { %v960_v4 = vadd.f32 %v959_v38, %v933_v43 }
 0x2ca   :  { %v983_v3 = vpop.f32.mrf.mxu0  ;;  %v1053_v16 = vpop.f32.mrf.mxu1 }
 0x2cb   :  { %v984_v5 = vadd.f32 %v983_v3, %v960_v4 }
 0x2cd   :  { %v1008_v9 = vadd.f32 %v1007_v49, %v984_v5 }
 0x2d2   :  { %v1031_v10 = vpop.f32.mrf.mxu0 }
 0x2d3   :  { %v1032_v11 = vadd.f32 %v1031_v10, %v1008_v9 }
 0x2d5   :  { %v1054_v17 = vadd.f32 %v1053_v16, %v1032_v11 }
 0x2d7   :  { %v1056_v20 = vmul.f32 %v1054_v17, %v1614_v28 }
 0x2d9   :  { %v1061_v24 = vmul.f32 %v1085_v22, %v1056_v20 }
 0x2db   :  { %v1066_v25 = vadd.f32 %v1086_v23, %v1061_v24 }
 0x2dd   :  { %1067 = vst [vmem:[#allocation2] sm:$0xf] %v1066_v25 }
 0x2de   :  { %1078 = dma.vmem_to_hbm [thread:$0]  %s1074_s6, 64, %s1076_s9, [#allocation3]  }
 0x2df   :  { %1115 = dma.done.wait [#allocation3], 64  }
 0x2e0   :  { %1116 = vsyncadd [#allocation3], 4294967232 }
 0x2e1   :  { %1083 = vsyncpa [#allocation3], 1 }

</bundles_post_ra>
